<compile_context>
chip_gen: v7x
topology: tpu7x:2x2x1
jax: 0.10.0
libtpu: 0.0.40
codegen_flags: <defaults>
</compile_context>

<pallas_src>
import jax
import jax.numpy as jnp
from jax.experimental import pallas as pl
from jax.experimental.pallas import tpu as pltpu


def _attn_softmax_kernel(hw_ref, eo_ref, out_ref):
    # hw_ref : (bt, H)     projected hidden rows, hW = hidden @ W   (input dtype)
    # eo_ref : (L, bt, H)  encoder outputs, native seq-major layout
    # out_ref: (bt, L)     softmax attention weights (f32)
    hw = hw_ref[...]
    eo = eo_ref[...]

    # energies[l, b] = sum_h eo[l, b, h] * hw[b, h]
    # VPU multiply in the input dtype; f32 accumulation on the lane reduce.
    e_lb = jnp.sum(eo * hw[None, :, :], axis=-1, dtype=jnp.float32)   # (L, bt)
    energies = e_lb.T                                                 # (bt, L)

    # Numerically-stable softmax over L (full L extent resident per block).
    m = jnp.max(energies, axis=-1, keepdims=True)
    ex = jnp.exp(energies - m)
    s = jnp.sum(ex, axis=-1, keepdims=True)
    out_ref[...] = (ex / s).astype(out_ref.dtype)


def _plan_tiles(B, L, H, eo_itemsize):
    """Pick the batch tile bt and an explicit scoped-VMEM limit.

    Sized against the tightest generation (v7x: 64 MiB physical VMEM) so the
    same plan also fits v5e (16 MiB default scoped) and v6e.
    """
    if B <= 8:
        bt = B                                    # full batch, single block
    else:
        # Bytes needed per batch row in one grid step:
        #   double-buffered eo block            : 2 * L * H * itemsize
        #   worst-case f32 temporaries          : L * H * 4  (+ small softmax temps)
        per_row = 2 * L * H * eo_itemsize + L * H * 4 + 32 * L + 8 * H
        budget = 44 << 20
        bt = int(max(8, min(256, (budget // per_row) // 8 * 8)))
        # Keep >= 2 grid steps so megacore sharding / DMA pipelining have work.
        bt = min(bt, max(8, (((B + 1) // 2) + 7) // 8 * 8))

    eo_block = L * bt * H * eo_itemsize
    ws = (2 * eo_block                   # double-buffered eo
          + L * bt * H * 4               # f32 temporaries
          + 2 * bt * H * eo_itemsize     # double-buffered hW rows
          + 2 * bt * L * 4)              # double-buffered output
    vmem_limit = int(min(max(ws * 1.25 + (2 << 20), 16 << 20), 58 << 20))
    return bt, vmem_limit


def attn_general(hidden, encoder_outputs, weight, bias=None):
    """method='general' Attn forward.

    hidden: (1, B, H), encoder_outputs: (L, B, H), weight: (H, H) in nn.Linear
    (out, in) layout, bias: (H,).  Returns (B, 1, L) softmax attention weights.
    The bias is accepted for interface fidelity but is softmax-invariant
    (constant over L per row), so it never reaches the kernel.
    """
    L, B, H = encoder_outputs.shape

    # Hoisted projection:
    #   energy[b, l] = (h @ W)[b, :] . eo[l, b, :]  (+ h.bias, cancelled by softmax)
    h2d = hidden.reshape(B, H).astype(jnp.float32)
    hW = jnp.dot(h2d, weight.astype(jnp.float32),
                 preferred_element_type=jnp.float32)
    hW = hW.astype(encoder_outputs.dtype)          # keep wire/VMEM dtype of eo

    bt, vmem_limit = _plan_tiles(B, L, H, encoder_outputs.dtype.itemsize)
    nb = -(-B // bt)                               # cdiv; partial last block is clipped

    cost = pl.CostEstimate(
        flops=2 * B * L * H + 5 * B * L,
        transcendentals=B * L,
        bytes_accessed=(encoder_outputs.size * encoder_outputs.dtype.itemsize
                        + hW.size * hW.dtype.itemsize
                        + B * L * 4),
    )

    out2d = pl.pallas_call(
        _attn_softmax_kernel,
        out_shape=jax.ShapeDtypeStruct((B, L), jnp.float32),
        grid=(nb,),
        in_specs=[
            pl.BlockSpec((bt, H), lambda i: (i, 0)),         # hW rows
            pl.BlockSpec((L, bt, H), lambda i: (0, i, 0)),   # eo, native (L,B,H)
        ],
        out_specs=pl.BlockSpec((bt, L), lambda i: (i, 0)),   # lane-dense (bt, L)
        compiler_params=pltpu.CompilerParams(
            dimension_semantics=("parallel",),               # shard batch tiles (v7x)
            vmem_limit_bytes=vmem_limit,
        ),
        cost_estimate=cost,
    )(hW, encoder_outputs)

    return out2d[:, None, :]                                 # (B, 1, L)


def reference_jax(hidden, encoder_outputs, weight, bias):
    """Pure-JAX reference mirroring the PyTorch loops (bias included)."""
    L, B, H = encoder_outputs.shape
    eo = jnp.transpose(encoder_outputs, (1, 0, 2)).astype(jnp.float32)   # (B, L, H)
    proj = jnp.einsum("blj,kj->blk", eo, weight.astype(jnp.float32)) + bias
    energies = jnp.einsum("bh,blh->bl",
                          hidden.reshape(B, H).astype(jnp.float32), proj)
    return jax.nn.softmax(energies, axis=-1)[:, None, :]


if __name__ == "__main__":
    B, L, H = 4, 16, 32
    key = jax.random.PRNGKey(0)
    k1, k2, k3, k4 = jax.random.split(key, 4)

    hidden = jax.random.normal(k1, (1, B, H), dtype=jnp.float32)
    encoder_outputs = jax.random.normal(k2, (L, B, H), dtype=jnp.float32)

    # Deterministic nn.Linear(H, H)-style init (uniform in +-1/sqrt(H)).
    bound = 1.0 / (H ** 0.5)
    weight = jax.random.uniform(k3, (H, H), jnp.float32, -bound, bound)
    bias = jax.random.uniform(k4, (H,), jnp.float32, -bound, bound)

    out = attn_general(hidden, encoder_outputs, weight, bias)
    out = jax.block_until_ready(out)

    ref = reference_jax(hidden, encoder_outputs, weight, bias)
    assert out.shape == (B, 1, L), out.shape
    assert jnp.allclose(out, ref, atol=1e-4, rtol=1e-4), "mismatch vs reference"
    assert jnp.allclose(jnp.sum(out, axis=-1), 1.0, atol=1e-5)

    print("KERNEL_OK")
</pallas_src>

<mosaic_0001>
module attributes {stable_mosaic.version = 11 : i64} {
  func.func @_attn_softmax_kernel(%arg0: i32, %arg1: memref<4x32xf32, #tpu.memory_space<vmem>>, %arg2: memref<16x4x32xf32, #tpu.memory_space<vmem>>, %arg3: memref<4x16xf32, #tpu.memory_space<vmem>>) attributes {dimension_semantics = [#tpu.dimension_semantics<parallel>], iteration_bounds = array<i64: 1>, scalar_prefetch = 0 : i64, scratch_operands = 0 : i64, tpu.core_type = #tpu.core_type<tc>, window_params = [{transform_indices = @transform_0, window_bounds = array<i64: 4, 32>}, {transform_indices = @transform_1, window_bounds = array<i64: 16, 4, 32>}, {transform_indices = @transform_2, window_bounds = array<i64: 4, 16>}]} {
    %c0 = arith.constant 0 : index
    %c0_0 = arith.constant 0 : index
    %0 = vector.load %arg1[%c0, %c0_0] : memref<4x32xf32, #tpu.memory_space<vmem>>, vector<4x32xf32>
    %c0_1 = arith.constant 0 : index
    %c0_2 = arith.constant 0 : index
    %c0_3 = arith.constant 0 : index
    %1 = vector.load %arg2[%c0_1, %c0_2, %c0_3] : memref<16x4x32xf32, #tpu.memory_space<vmem>>, vector<16x4x32xf32>
    %2 = vector.shape_cast %0 : vector<4x32xf32> to vector<1x4x32xf32>
    %3 = vector.broadcast %2 : vector<1x4x32xf32> to vector<16x4x32xf32>
    %4 = arith.mulf %1, %3 : vector<16x4x32xf32>
    %cst = arith.constant dense<0.000000e+00> : vector<16x4xf32>
    %5 = vector.multi_reduction <add>, %4, %cst [2] : vector<16x4x32xf32> to vector<16x4xf32>
    %6 = tpu.transpose %5, [1, 0] : vector<16x4xf32> -> vector<4x16xf32>
    %cst_4 = arith.constant dense<0xFF800000> : vector<4xf32>
    %7 = vector.multi_reduction <maximumf>, %6, %cst_4 [1] : vector<4x16xf32> to vector<4xf32>
    %8 = vector.shape_cast %7 : vector<4xf32> to vector<4x1xf32>
    %9 = vector.broadcast %8 : vector<4x1xf32> to vector<4x16xf32>
    %10 = arith.subf %6, %9 : vector<4x16xf32>
    %11 = math.exp %10 : vector<4x16xf32>
    %cst_5 = arith.constant dense<0.000000e+00> : vector<4xf32>
    %12 = vector.multi_reduction <add>, %11, %cst_5 [1] : vector<4x16xf32> to vector<4xf32>
    %13 = vector.shape_cast %12 : vector<4xf32> to vector<4x1xf32>
    %14 = vector.broadcast %13 : vector<4x1xf32> to vector<4x16xf32>
    %15 = arith.divf %11, %14 : vector<4x16xf32>
    %c0_6 = arith.constant 0 : index
    %c0_7 = arith.constant 0 : index
    %16 = vector.load %arg3[%c0_6, %c0_7] : memref<4x16xf32, #tpu.memory_space<vmem>>, vector<4x16xf32>
    tpu.vector_store %arg3[%c0_6, %c0_7], %15 {strides = array<i32>} : memref<4x16xf32, #tpu.memory_space<vmem>>, vector<4x16xf32>,
    return
  }
  func.func @transform_0(%arg0: i32) -> (i32, i32) {
    %c0_i32 = arith.constant 0 : i32
    %c0_i32_0 = arith.constant 0 : i32
    return %arg0, %c0_i32 : i32, i32
  }
  func.func @transform_1(%arg0: i32) -> (i32, i32, i32) {
    %c0_i32 = arith.constant 0 : i32
    %c0_i32_0 = arith.constant 0 : i32
    %c0_i32_1 = arith.constant 0 : i32
    return %c0_i32, %arg0, %c0_i32_0 : i32, i32, i32
  }
  func.func @transform_2(%arg0: i32) -> (i32, i32) {
    %c0_i32 = arith.constant 0 : i32
    %c0_i32_0 = arith.constant 0 : i32
    return %arg0, %c0_i32 : i32, i32
  }
}

</mosaic_0001>

<bundles_post_ra>
// kernel: tpu_custom_call.1
= control target key start
LH: loop header
LB: loop body
LE: loop exit
PB: predicated region body
PF: predicated region fallthrough
CT: control target
= control target key end

     0   :  { %7 = vsyncpa [#allocation3], 0  ;;  %s464_s0 = inlined_call_operand.hbm [shape: f32[4,32], index: 0, kind: input, shape index: {}]   ;;  %s465_s1 = inlined_call_operand.hbm [shape: f32[16,4,32], index: 1, kind: input, shape index: {}]   ;;  %s466_s2 = inlined_call_operand.hbm [shape: f32[4,16], index: 2, kind: output, shape index: {}]  }
   0x1   :  { %8 = vsyncpa [#allocation6], 0 }
   0x2   :  { %9 = vsyncpa [#allocation4], 0  ;;  %s368_s9 = smov [#allocation2]   ;;  %s369_s11 = smov [#allocation5]  }
   0x3   :  { %s16_s10 = sshll.u32 %s368_s9, 4  ;;  %s25_s12 = sshll.u32 %s369_s11, 4  ;;  %s17_s10 = int_to_ptr.vmem [resolvable:$true] %s16_s10  ;;  %s388_s12 = int_to_ptr.vmem [resolvable:$true] %s25_s12 }
   0x4   :  { %s296_s15 = scalar_lea.hbm %s464_s0, 64 }
   0x5   :  { %p297_p0 = scmp.ne.s32.totalorder %s464_s0, %s296_s15  ;;  %p300_p1 = scmp.lt.u32.totalorder %s296_s15, %s464_s0 }
   0x7   :  { %p302_p2 = pnand %p300_p1, %p297_p0 }
   0x9   :  { %305 = shalt.err (!%p302_p2)
}
   0xa   :  { %s306_s20 = scalar_lea.vmem %s17_s10, 64  ;;  %p311_p4 = scmp.lt.s32.totalorder %s17_s10, %s17_s10 }
   0xb   :  { %p307_p3 = scmp.ne.s32.totalorder %s17_s10, %s306_s20  ;;  %p312_p5 = scmp.lt.s32.totalorder %s306_s20, %s306_s20 }
   0xd   :  { %p313_p6 = por %p312_p5, %p311_p4 }
   0xf   :  { %p314_p7 = pnand %p313_p6, %p307_p3 }
  0x11   :  { %317 = shalt.err (!%p314_p7)
}
  0x12   :  { %19 = dma.hbm_to_vmem [thread:$0]  %s464_s0, 64, %s17_s10, [#allocation3]  }
  0x13   :  { %s318_s25 = scalar_lea.hbm %s465_s1, 1024 }
  0x14   :  { %p319_p8 = scmp.ne.s32.totalorder %s465_s1, %s318_s25  ;;  %p322_p9 = scmp.lt.u32.totalorder %s318_s25, %s465_s1 }
  0x16   :  { %p324_p10 = pnand %p322_p9, %p319_p8 }
  0x18   :  { %327 = shalt.err (!%p324_p10)
}
  0x19   :  { %s328_s30 = scalar_lea.vmem %s388_s12, 1024  ;;  %p333_p12 = scmp.lt.s32.totalorder %s388_s12, %s388_s12 }
  0x1a   :  { %p329_p11 = scmp.ne.s32.totalorder %s388_s12, %s328_s30  ;;  %p334_p13 = scmp.lt.s32.totalorder %s328_s30, %s328_s30 }
  0x1c   :  { %p335_p0 = por %p334_p13, %p333_p12 }
  0x1e   :  { %p336_p1 = pnand %p335_p0, %p329_p11 }
  0x20   :  { %339 = shalt.err (!%p336_p1)
}
  0x21   :  { %s370_s0 = smov 64   ;;  %s371_s3 = smov 4  }
  0x22   :  { %31 = dma.hbm_to_vmem [thread:$0]  %s465_s1, 1024, %s388_s12, [#allocation6], %s370_s0, %s370_s0, %s371_s3  }
  0x23   :  { %362 = dma.done.wait [#allocation3], 64  }
  0x24   :  { %363 = vsyncadd [#allocation3], 4294967232 }
  0x25   :  { %364 = dma.done.wait [#allocation6], 1024  }
  0x26   :  { %365 = vsyncadd [#allocation6], 4294966272  ;;  %vm71_vm0 = vcmask 257024   ;;  %v38_v0 = vld [vmem:[#allocation2] sm:$0xf]  ;;  %v136_v51 = vlaneseq  ;;  %vm202_vm1 = vcmask 1041409  }
  0x27   :  { %v41_v1 = vld [vmem:[#allocation5 + $0x8] sm:$0xf]  ;;  %v39_v2 = vld [vmem:[#allocation5] sm:$0xf]  ;;  %v42_v5 = vld [vmem:[#allocation5 + $0xc] sm:$0xf] }
  0x28   :  { %v57_v3 = vmul.f32 %v41_v1, %v38_v0  ;;  %v55_v4 = vmul.f32 %v39_v2, %v38_v0  ;;  %v40_v6 = vld [vmem:[#allocation5 + $0x4] sm:$0xf]  ;;  %v58_v7 = vmul.f32 %v42_v5, %v38_v0  ;;  %v47_v10 = vld [vmem:[#allocation5 + $0x20] sm:$0xf]  ;;  %v49_v17 = vld [vmem:[#allocation5 + $0x28] sm:$0xf] }
  0x29   :  { %v56_v8 = vmul.f32 %v40_v6, %v38_v0  ;;  %v48_v9 = vld [vmem:[#allocation5 + $0x24] sm:$0xf]  ;;  %v63_v16 = vmul.f32 %v47_v10, %v38_v0  ;;  %v43_v18 = vld [vmem:[#allocation5 + $0x10] sm:$0xf]  ;;  %v65_v21 = vmul.f32 %v49_v17, %v38_v0  ;;  %v50_v23 = vld [vmem:[#allocation5 + $0x2c] sm:$0xf] }
  0x2a   :  { %v78_v11 = vsel %vm71_vm0, %v57_v3, 0.0  ;;  %v72_v12 = vsel %vm71_vm0, %v55_v4, 0.0  ;;  %v81_v13 = vsel %vm71_vm0, %v58_v7, 0.0  ;;  %v64_v15 = vmul.f32 %v48_v9, %v38_v0  ;;  %v44_v24 = vld [vmem:[#allocation5 + $0x14] sm:$0xf]  ;;  %s372_s1 = smov [#allocation7]  }
  0x2b   :  { %79 = vadd.xlane.f32.xlu1 %v78_v11  ;;  %73 = vadd.xlane.f32.xlu0 %v72_v12  ;;  %v75_v14 = vsel %vm71_vm0, %v56_v8, 0.0  ;;  %v96_v20 = vsel %vm71_vm0, %v63_v16, 0.0  ;;  %v59_v22 = vmul.f32 %v43_v18, %v38_v0  ;;  %v102_v25 = vsel %vm71_vm0, %v65_v21, 0.0  ;;  %v51_v29 = vld [vmem:[#allocation5 + $0x30] sm:$0xf]  ;;  %s276_s6 = sshll.u32 %s372_s1, 4  ;;  %s277_s6 = int_to_ptr.vmem [resolvable:$true] %s276_s6 }
  0x2c   :  { %v99_v19 = vsel %vm71_vm0, %v64_v15, 0.0  ;;  %v66_v27 = vmul.f32 %v50_v23, %v38_v0  ;;  %v60_v28 = vmul.f32 %v44_v24, %v38_v0  ;;  %v45_v30 = vld [vmem:[#allocation5 + $0x18] sm:$0xf]  ;;  %v67_v33 = vmul.f32 %v51_v29, %v38_v0  ;;  %v52_v35 = vld [vmem:[#allocation5 + $0x34] sm:$0xf]  ;;  %s340_s7 = scalar_lea.vmem %s277_s6, 64  ;;  %p345_p3 = scmp.lt.s32.totalorder %s277_s6, %s277_s6 }
  0x2d   :  { %v84_v26 = vsel %vm71_vm0, %v59_v22, 0.0  ;;  %v61_v34 = vmul.f32 %v45_v30, %v38_v0  ;;  %v46_v36 = vld [vmem:[#allocation5 + $0x1c] sm:$0xf]  ;;  %v68_v39 = vmul.f32 %v52_v35, %v38_v0  ;;  %v53_v41 = vld [vmem:[#allocation5 + $0x38] sm:$0xf]  ;;  %v137_v54 = vand.u32 127, %v136_v51  ;;  %p341_p2 = scmp.ne.s32.totalorder %s277_s6, %s340_s7  ;;  %p346_p4 = scmp.lt.s32.totalorder %s340_s7, %s340_s7 }
  0x2e   :  { %v105_v31 = vsel %vm71_vm0, %v66_v27, 0.0  ;;  %v87_v32 = vsel %vm71_vm0, %v60_v28, 0.0  ;;  %v108_v37 = vsel %vm71_vm0, %v67_v33, 0.0  ;;  %v62_v40 = vmul.f32 %v46_v36, %v38_v0  ;;  %v54_v42 = vld [vmem:[#allocation5 + $0x3c] sm:$0xf] }
  0x2f   :  { %82 = vadd.xlane.f32.xlu1 %v81_v13  ;;  %76 = vadd.xlane.f32.xlu0 %v75_v14  ;;  %v90_v38 = vsel %vm71_vm0, %v61_v34, 0.0  ;;  %v111_v43 = vsel %vm71_vm0, %v68_v39, 0.0  ;;  %v69_v45 = vmul.f32 %v53_v41, %v38_v0  ;;  %v70_v46 = vmul.f32 %v54_v42, %v38_v0  ;;  %p347_p5 = por %p346_p4, %p345_p3 }
  0x30   :  { %v93_v44 = vsel %vm71_vm0, %v62_v40, 0.0  ;;  %v139_v55 = vshrl.u32 %v136_v51, 7  ;;  %vm204_vm2 = vcmask 1042434   ;;  %vm206_vm3 = vcmask 1043459  }
  0x31   :  { %v114_v47 = vsel %vm71_vm0, %v69_v45, 0.0  ;;  %v117_v48 = vsel %vm71_vm0, %v70_v46, 0.0  ;;  %vm208_vm4 = vcmask 1044484   ;;  %vm210_vm5 = vcmask 1045509   ;;  %p348_p6 = pnand %p347_p5, %p341_p2 }
  0x32   :  { %v140_v58 = vsub.s32 %v137_v54, %v139_v55  ;;  %vm212_vm6 = vcmask 1046534   ;;  %vm214_vm7 = vcmask 1047559   ;;  %vm257_vm8 = vcmask 125952  }
  0x33   :  { %100 = vadd.xlane.f32.xlu1 %v99_v19  ;;  %97 = vadd.xlane.f32.xlu0 %v96_v20 }
  0x37   :  { %103 = vadd.xlane.f32.xlu1 %v102_v25  ;;  %85 = vadd.xlane.f32.xlu0 %v84_v26 }
  0x3b   :  { %106 = vadd.xlane.f32.xlu1 %v105_v31  ;;  %88 = vadd.xlane.f32.xlu0 %v87_v32 }
  0x3f   :  { %109 = vadd.xlane.f32.xlu1 %v108_v37  ;;  %91 = vadd.xlane.f32.xlu0 %v90_v38 }
  0x43   :  { %112 = vadd.xlane.f32.xlu1 %v111_v43  ;;  %94 = vadd.xlane.f32.xlu0 %v93_v44 }
  0x47   :  { %115 = vadd.xlane.f32.xlu0 %v114_v47  ;;  %118 = vadd.xlane.f32.xlu1 %v117_v48 }
  0xb8   :  { %v80_v49 = vpop.xlane.xlu1 %79  ;;  %v74_v50 = vpop.xlane.xlu0 %73 }
  0xb9   :  { %v141_v62 = vrot.slane %v74_v50, %v140_v58  ;;  %v149_v2 = vrot.slane %v80_v49, %v140_v58 }
  0xbc   :  { %v83_v52 = vpop.xlane.xlu1 %82  ;;  %v77_v53 = vpop.xlane.xlu0 %76 }
  0xbd   :  { %v145_v61 = vrot.slane %v77_v53, %v140_v58  ;;  %v153_v3 = vrot.slane %v83_v52, %v140_v58 }
  0xbf   :  { %v203_v1 = vsel %vm202_vm1, %v145_v61, %v141_v62 }
  0xc0   :  { %v101_v56 = vpop.xlane.xlu1 %100  ;;  %v98_v57 = vpop.xlane.xlu0 %97  ;;  %v205_v4 = vsel %vm204_vm2, %v149_v2, %v203_v1 }
  0xc1   :  { %v177_v9 = vrot.slane %v101_v56, %v140_v58  ;;  %v173_v10 = vrot.slane %v98_v57, %v140_v58  ;;  %v207_v13 = vsel %vm206_vm3, %v153_v3, %v205_v4 }
  0xc3   :  { %v216_v21 = vsel %vm202_vm1, %v177_v9, %v173_v10 }
  0xc4   :  { %v104_v59 = vpop.xlane.xlu1 %103  ;;  %v86_v60 = vpop.xlane.xlu0 %85 }
  0xc5   :  { %v157_v5 = vrot.slane %v86_v60, %v140_v58  ;;  %v181_v12 = vrot.slane %v104_v59, %v140_v58 }
  0xc7   :  { %v209_v14 = vsel %vm208_vm4, %v157_v5, %v207_v13  ;;  %v217_v24 = vsel %vm204_vm2, %v181_v12, %v216_v21 }
  0xc8   :  { %v107_v63 = vpop.xlane.xlu1 %106  ;;  %v89_v0 = vpop.xlane.xlu0 %88 }
  0xc9   :  { %v161_v8 = vrot.slane %v89_v0, %v140_v58  ;;  %v185_v15 = vrot.slane %v107_v63, %v140_v58 }
  0xcb   :  { %v211_v20 = vsel %vm210_vm5, %v161_v8, %v209_v14  ;;  %v218_v26 = vsel %vm206_vm3, %v185_v15, %v217_v24 }
  0xcc   :  { %v110_v6 = vpop.xlane.xlu1 %109  ;;  %v92_v7 = vpop.xlane.xlu0 %91 }
  0xcd   :  { %v165_v11 = vrot.slane %v92_v7, %v140_v58  ;;  %v189_v18 = vrot.slane %v110_v6, %v140_v58 }
  0xcf   :  { %v213_v23 = vsel %vm212_vm6, %v165_v11, %v211_v20  ;;  %v219_v29 = vsel %vm208_vm4, %v189_v18, %v218_v26 }
  0xd0   :  { %v113_v16 = vpop.xlane.xlu1 %112  ;;  %v95_v17 = vpop.xlane.xlu0 %94 }
  0xd1   :  { %v169_v19 = vrot.slane %v95_v17, %v140_v58  ;;  %v193_v22 = vrot.slane %v113_v16, %v140_v58 }
  0xd3   :  { %v215_v25 = vsel %vm214_vm7, %v169_v19, %v213_v23  ;;  %v220_v32 = vsel %vm210_vm5, %v193_v22, %v219_v29 }
  0xd4   :  { %225 = vxpose.xlu0.b32.start [1/2] (short) (narrow) %v215_v25, 8  ;;  %v116_v27 = vpop.xlane.xlu0 %115  ;;  %v119_v28 = vpop.xlane.xlu1 %118 }
  0xd5   :  { %v197_v30 = vrot.slane %v116_v27, %v140_v58  ;;  %v201_v31 = vrot.slane %v119_v28, %v140_v58 }
  0xd7   :  { %v221_v33 = vsel %vm212_vm6, %v197_v30, %v220_v32 }
  0xd8   :  { %v222_v34 = vsel %vm214_vm7, %v201_v31, %v221_v33 }
  0xd9   :  { %226 = vxpose.xlu0.b32.end [2/2] (short) (narrow) %v222_v34, 8 }
 0x155   :  { %v241_v35 = vpop.trf.xlu0 }
 0x156   :  { %v258_v36 = vsel %vm257_vm8, %v241_v35, -inf }
 0x157   :  { %259 = vmax.xlane.f32.xlu1 %v258_v36 }
 0x1e4   :  { %v260_v37 = vpop.xlane.xlu1 %259 }
 0x1e5   :  { %v261_v38 = vsub.f32 %v241_v35, %v260_v37 }
 0x1e7   :  { %v262_v39 = vmul.f32 1.442695, %v261_v38 }
 0x1e9   :  { %292 = vpow2.f32 %v262_v39 }
 0x1f3   :  { %v293_v40 = vpop.eup %292 }
 0x1f4   :  { %v264_v41 = vsel %vm257_vm8, %v293_v40, 0.0 }
 0x1f5   :  { %265 = vadd.xlane.f32.xlu1 %v264_v41 }
 0x282   :  { %v266_v42 = vpop.xlane.xlu1 %265 }
 0x283   :  { %294 = vrcp.f32 %v266_v42 }
 0x28d   :  { %v295_v43 = vpop.eup %294 }
 0x28e   :  { %v268_v44 = vmul.f32 %v295_v43, %v293_v40 }
 0x290   :  { %269 = vst.msk [vmem:[#allocation7] sm:$0xf] %vm257_vm8, %v268_v44 }
 0x291   :  { %351 = shalt.err (!%p348_p6)
}
 0x292   :  { %s352_s10 = scalar_lea.hbm %s466_s2, 64 }
 0x293   :  { %p353_p7 = scmp.ne.s32.totalorder %s466_s2, %s352_s10  ;;  %p356_p8 = scmp.lt.u32.totalorder %s352_s10, %s466_s2 }
 0x295   :  { %p358_p9 = pnand %p356_p8, %p353_p7 }
 0x297   :  { %361 = shalt.err (!%p358_p9)
}
 0x298   :  { %279 = dma.vmem_to_hbm [thread:$0]  %s277_s6, 64, %s466_s2, [#allocation4]  }
 0x299   :  { %366 = dma.done.wait [#allocation4], 64  }
 0x29a   :  { %367 = vsyncadd [#allocation4], 4294967232 }
 0x29b   :  { %283 = vsyncpa [#allocation3], 1 }
 0x29c   :  { %284 = vsyncpa [#allocation6], 1 }
 0x29d   :  { %285 = vsyncpa [#allocation4], 1 }

</bundles_post_ra>
